<compile_context>
chip_gen: v6e
topology: v6e:2x2x1
jax: 0.10.0
libtpu: 0.0.40
codegen_flags: <defaults>
</compile_context>

<pallas_src>
import functools

import jax
import jax.numpy as jnp
from jax.experimental import pallas as pl
from jax.experimental.pallas import tpu as pltpu

VEC_ROWS = 16  # sublane-aligned rows reserved for the 10 vector params in fpack


# --------------------------------------------------------------------------
# In-kernel helpers
# --------------------------------------------------------------------------
def _layernorm(v, g, b, eps=1e-5):
    # One-pass moments: sum and sum-of-squares issue as independent XLU reductions.
    n = float(v.shape[-1])
    s = jnp.sum(v, axis=-1, keepdims=True)
    sq = jnp.sum(v * v, axis=-1, keepdims=True)
    mu = s * (1.0 / n)
    var = sq * (1.0 / n) - mu * mu
    return (v - mu) * jax.lax.rsqrt(var + eps) * g + b


def _bf16_dot(a_f32, w_bf16):
    # MXU fast path: bf16 operands (weights already bf16 at rest), f32 accumulate.
    return jnp.dot(a_f32.astype(jnp.bfloat16), w_bf16,
                   preferred_element_type=jnp.float32)


# --------------------------------------------------------------------------
# Fused kernel
# --------------------------------------------------------------------------
def fused_actor_kernel(adj_ref, x_ref, w_ref, f_ref, *rest, dims, has_mask):
    F, G, H, A = dims
    if has_mask:
        avail_ref, out_ref = rest
    else:
        (out_ref,) = rest

    adj = adj_ref[...]                                   # (R, R) f32 block-diagonal
    x = x_ref[...]                                       # (R, F) f32
    R = x.shape[0]

    # ---- Aps_GNN: one flat 2-D neighbourhood aggregation (f32 for parity)
    feat = jnp.dot(adj, x, preferred_element_type=jnp.float32)       # (R, F)

    # ---- packed parameters: static slices of two resident VMEM tiles
    wpack = w_ref[...]                                   # (3, Dmax, Dmax) bf16
    fpack = f_ref[...]                                   # (VEC_ROWS + H, Dmax) f32
    wg = wpack[0, :F, :G]
    w1 = wpack[1, :G, :H]
    w2 = wpack[2, :H, :H]
    bg = fpack[0:1, :G]
    ln0g, ln0b = fpack[1:2, :G], fpack[2:3, :G]
    b1 = fpack[3:4, :H]
    ln1g, ln1b = fpack[4:5, :H], fpack[5:6, :H]
    b2 = fpack[6:7, :H]
    ln2g, ln2b = fpack[7:8, :H], fpack[8:9, :H]
    ba = fpack[9:10, :A]
    wa = fpack[VEC_ROWS:VEC_ROWS + H, :A]                # action head stays f32

    # ---- Aps_GNN projection + MLPBase (feature LN + 2x Linear/ReLU/LN)
    h = jnp.maximum(_bf16_dot(feat, wg) + bg, 0.0)                    # (R, G)
    h = _layernorm(h, ln0g, ln0b)
    h = _layernorm(jnp.maximum(_bf16_dot(h, w1) + b1, 0.0), ln1g, ln1b)
    h = _layernorm(jnp.maximum(_bf16_dot(h, w2) + b2, 0.0), ln2g, ln2b)

    # ---- ACTLayer: f32 logits -> deterministic action (mode) + its log-prob
    logits = jnp.dot(h, wa, preferred_element_type=jnp.float32) + ba  # (R, A)
    if has_mask:
        logits = jnp.where(avail_ref[...] > 0.0, logits, -1e9)
    m = jnp.max(logits, axis=-1, keepdims=True)
    z = logits - m
    lse = jnp.log(jnp.sum(jnp.exp(z), axis=-1, keepdims=True))
    logp = -lse                # log-prob of argmax action: max(logits) - full_lse

    idx = jax.lax.broadcasted_iota(jnp.int32, logits.shape, 1)
    act = jnp.min(jnp.where(logits >= m, idx, A), axis=-1, keepdims=True)  # (R, 1)

    # ---- lane-dense output slab: column 0 = action, column 1 = log-prob
    lane = jax.lax.broadcasted_iota(jnp.int32, (R, 128), 1)
    slab = jnp.where(lane == 0,
                     jnp.broadcast_to(act.astype(jnp.float32), (R, 128)),
                     jnp.where(lane == 1,
                               jnp.broadcast_to(logp, (R, 128)),
                               0.0))
    out_ref[...] = slab


def _full(shape):
    return pl.BlockSpec(shape, lambda i, _n=len(shape): (0,) * _n)


def fused_forward(adj_bd, x_flat, wpack, fpack, avail, dims):
    R = x_flat.shape[0]
    has_mask = avail is not None
    kernel = functools.partial(fused_actor_kernel, dims=dims, has_mask=has_mask)

    in_specs = [_full(adj_bd.shape), _full(x_flat.shape),
                _full(wpack.shape), _full(fpack.shape)]
    args = [adj_bd, x_flat, wpack, fpack]
    if has_mask:
        in_specs.append(_full(avail.shape))
        args.append(avail)

    return pl.pallas_call(
        kernel,
        out_shape=jax.ShapeDtypeStruct((R, 128), jnp.float32),
        grid=(1,),
        in_specs=in_specs,
        out_specs=_full((R, 128)),
        compiler_params=pltpu.CompilerParams(
            dimension_semantics=("arbitrary",)),
    )(*args)


# --------------------------------------------------------------------------
# Parameter init / packing (done once, outside the hot path)
# --------------------------------------------------------------------------
def init_params(key, F, G, H, A):
    ks = jax.random.split(key, 4)
    scale = 0.5
    return {
        # Aps_GNN
        "wg": scale * jax.random.normal(ks[0], (F, G), jnp.float32),
        "bg": jnp.zeros((1, G), jnp.float32),
        # MLPBase
        "ln0g": jnp.ones((1, G), jnp.float32), "ln0b": jnp.zeros((1, G), jnp.float32),
        "w1": scale * jax.random.normal(ks[1], (G, H), jnp.float32),
        "b1": jnp.zeros((1, H), jnp.float32),
        "ln1g": jnp.ones((1, H), jnp.float32), "ln1b": jnp.zeros((1, H), jnp.float32),
        "w2": scale * jax.random.normal(ks[2], (H, H), jnp.float32),
        "b2": jnp.zeros((1, H), jnp.float32),
        "ln2g": jnp.ones((1, H), jnp.float32), "ln2b": jnp.zeros((1, H), jnp.float32),
        # ACTLayer
        "wa": 0.01 * jax.random.normal(ks[3], (H, A), jnp.float32),
        "ba": jnp.zeros((1, A), jnp.float32),
    }


def pack_params(params, F, G, H, A):
    """Consolidate all parameters into 2 HBM arrays (weights bf16 at rest)."""
    dmax = max(F, G, H, A)
    wpack = jnp.zeros((3, dmax, dmax), jnp.bfloat16)
    wpack = wpack.at[0, :F, :G].set(params["wg"].astype(jnp.bfloat16))
    wpack = wpack.at[1, :G, :H].set(params["w1"].astype(jnp.bfloat16))
    wpack = wpack.at[2, :H, :H].set(params["w2"].astype(jnp.bfloat16))

    fpack = jnp.zeros((VEC_ROWS + H, dmax), jnp.float32)
    vec_rows = [("bg", G), ("ln0g", G), ("ln0b", G),
                ("b1", H), ("ln1g", H), ("ln1b", H),
                ("b2", H), ("ln2g", H), ("ln2b", H),
                ("ba", A)]
    for r, (name, w) in enumerate(vec_rows):
        fpack = fpack.at[r, :w].set(params[name].reshape(-1))
    fpack = fpack.at[VEC_ROWS:VEC_ROWS + H, :A].set(params["wa"])
    return {"wpack": wpack, "fpack": fpack}


# --------------------------------------------------------------------------
# Full module wrapper (forward pass semantics of Aps_GR_Actor.forward)
# --------------------------------------------------------------------------
def aps_gr_actor_forward(packed, dims, adj, node_feats, rnn_states, masks,
                         available_actions=None, deterministic=True):
    # graph_batch = (adj, node_feats); forward() never routes through self.rnn.
    rnn_states = None if rnn_states is None else rnn_states.astype(jnp.float32)
    del masks, deterministic  # masks unused on forward(); deterministic mode only
    B, N, F = node_feats.shape
    R = B * N
    A = dims[3]

    # Layout plumbing in the wrapper: block-diagonal adjacency -> one 2-D matmul.
    # TODO(synk): at production B*N, keep (B,N,N) and tile the batch/neighbor axes
    #             instead of materializing the (R,R) block-diagonal.
    eye_b = jnp.eye(B, dtype=adj.dtype)
    adj_bd = (adj[:, :, None, :] * eye_b[:, None, :, None]).reshape(R, R)
    x_flat = node_feats.reshape(R, F)

    avail = None
    if available_actions is not None:
        avail = available_actions.astype(jnp.float32).reshape(R, A)

    slab = fused_forward(adj_bd, x_flat, packed["wpack"], packed["fpack"],
                         avail, dims)                     # (R, 128) lane-dense
    actions = slab[:, 0:1].astype(jnp.int32)
    action_log_probs = slab[:, 1:2]
    return actions, action_log_probs, rnn_states


if __name__ == "__main__":
    B, N, F = 2, 8, 8        # batch graphs, agents/nodes per graph, node feature dim
    G, H, A = 32, 32, 5      # gnn out dim, hidden_size, discrete action dim
    dims = (F, G, H, A)

    key = jax.random.PRNGKey(0)
    kx, ka, kp = jax.random.split(key, 3)

    node_feats = jax.random.normal(kx, (B, N, F), jnp.float32)
    adj_raw = (jax.random.uniform(ka, (B, N, N)) < 0.5).astype(jnp.float32)
    adj = adj_raw + jnp.eye(N, dtype=jnp.float32)[None]                  # self loops
    adj = adj / jnp.sum(adj, axis=-1, keepdims=True)                     # row-normalize

    rnn_states = jnp.zeros((B * N, 1, H), jnp.float32)
    masks = jnp.ones((B * N, 1), jnp.float32)

    params = init_params(kp, F, G, H, A)
    packed = pack_params(params, F, G, H, A)              # done once, not per call

    # --- unmasked path (no avail DMA, no per-row select) ---
    actions, action_log_probs, rnn_out = aps_gr_actor_forward(
        packed, dims, adj, node_feats, rnn_states, masks)
    jax.block_until_ready((actions, action_log_probs, rnn_out))

    assert actions.shape == (B * N, 1) and actions.dtype == jnp.int32
    assert action_log_probs.shape == (B * N, 1)
    assert jnp.all(action_log_probs <= 0.0)
    assert rnn_out.shape == rnn_states.shape

    # --- masked path (available_actions provided; last action disallowed) ---
    avail = jnp.ones((B, N, A), jnp.float32).at[:, :, A - 1].set(0.0)
    actions_m, logp_m, _ = aps_gr_actor_forward(
        packed, dims, adj, node_feats, rnn_states, masks, available_actions=avail)
    jax.block_until_ready((actions_m, logp_m))

    assert actions_m.shape == (B * N, 1)
    assert jnp.all(actions_m != A - 1)       # masked action never chosen
    assert jnp.all(logp_m <= 0.0)

    print("KERNEL_OK")
</pallas_src>

<mosaic_0001>
module attributes {stable_mosaic.version = 11 : i64} {
  func.func @fused_actor_kernel(%arg0: i32, %arg1: memref<16x16xf32, #tpu.memory_space<vmem>>, %arg2: memref<16x8xf32, #tpu.memory_space<vmem>>, %arg3: memref<3x32x32xbf16, #tpu.memory_space<vmem>>, %arg4: memref<48x32xf32, #tpu.memory_space<vmem>>, %arg5: memref<16x128xf32, #tpu.memory_space<vmem>>) attributes {dimension_semantics = [#tpu.dimension_semantics<arbitrary>], iteration_bounds = array<i64: 1>, scalar_prefetch = 0 : i64, scratch_operands = 0 : i64, tpu.core_type = #tpu.core_type<tc>, window_params = [{pipeline_mode = #tpu.pipeline_mode<synchronous>, transform_indices = @transform_0, window_bounds = array<i64: 16, 16>}, {pipeline_mode = #tpu.pipeline_mode<synchronous>, transform_indices = @transform_1, window_bounds = array<i64: 16, 8>}, {pipeline_mode = #tpu.pipeline_mode<synchronous>, transform_indices = @transform_2, window_bounds = array<i64: 3, 32, 32>}, {pipeline_mode = #tpu.pipeline_mode<synchronous>, transform_indices = @transform_3, window_bounds = array<i64: 48, 32>}, {pipeline_mode = #tpu.pipeline_mode<synchronous>, transform_indices = @transform_4, window_bounds = array<i64: 16, 128>}]} {
    %c0 = arith.constant 0 : index
    %c0_0 = arith.constant 0 : index
    %0 = vector.load %arg1[%c0, %c0_0] : memref<16x16xf32, #tpu.memory_space<vmem>>, vector<16x16xf32>
    %c0_1 = arith.constant 0 : index
    %c0_2 = arith.constant 0 : index
    %1 = vector.load %arg2[%c0_1, %c0_2] : memref<16x8xf32, #tpu.memory_space<vmem>>, vector<16x8xf32>
    %cst = arith.constant dense<0.000000e+00> : vector<16x8xf32>
    %2 = tpu.matmul %0, %1, %cst {dimension_numbers = #tpu.dot_dimension_numbers<[1], [0], [0], [1], [0, 0, 1, 1], [], []>} : vector<16x16xf32>, vector<16x8xf32>, vector<16x8xf32> -> vector<16x8xf32>
    %c0_3 = arith.constant 0 : index
    %c0_4 = arith.constant 0 : index
    %c0_5 = arith.constant 0 : index
    %3 = vector.load %arg3[%c0_3, %c0_4, %c0_5] : memref<3x32x32xbf16, #tpu.memory_space<vmem>>, vector<3x32x32xbf16>
    %c0_6 = arith.constant 0 : index
    %c0_7 = arith.constant 0 : index
    %4 = vector.load %arg4[%c0_6, %c0_7] : memref<48x32xf32, #tpu.memory_space<vmem>>, vector<48x32xf32>
    %5 = vector.extract_strided_slice %3 {offsets = [0, 0, 0], sizes = [1, 8, 32], strides = [1, 1, 1]} : vector<3x32x32xbf16> to vector<1x8x32xbf16>
    %6 = vector.shape_cast %5 : vector<1x8x32xbf16> to vector<8x32xbf16>
    %7 = vector.extract_strided_slice %3 {offsets = [1, 0, 0], sizes = [1, 32, 32], strides = [1, 1, 1]} : vector<3x32x32xbf16> to vector<1x32x32xbf16>
    %8 = vector.shape_cast %7 : vector<1x32x32xbf16> to vector<32x32xbf16>
    %9 = vector.extract_strided_slice %3 {offsets = [2, 0, 0], sizes = [1, 32, 32], strides = [1, 1, 1]} : vector<3x32x32xbf16> to vector<1x32x32xbf16>
    %10 = vector.shape_cast %9 : vector<1x32x32xbf16> to vector<32x32xbf16>
    %11 = vector.extract_strided_slice %4 {offsets = [0, 0], sizes = [1, 32], strides = [1, 1]} : vector<48x32xf32> to vector<1x32xf32>
    %12 = vector.extract_strided_slice %4 {offsets = [1, 0], sizes = [1, 32], strides = [1, 1]} : vector<48x32xf32> to vector<1x32xf32>
    %13 = vector.extract_strided_slice %4 {offsets = [2, 0], sizes = [1, 32], strides = [1, 1]} : vector<48x32xf32> to vector<1x32xf32>
    %14 = vector.extract_strided_slice %4 {offsets = [3, 0], sizes = [1, 32], strides = [1, 1]} : vector<48x32xf32> to vector<1x32xf32>
    %15 = vector.extract_strided_slice %4 {offsets = [4, 0], sizes = [1, 32], strides = [1, 1]} : vector<48x32xf32> to vector<1x32xf32>
    %16 = vector.extract_strided_slice %4 {offsets = [5, 0], sizes = [1, 32], strides = [1, 1]} : vector<48x32xf32> to vector<1x32xf32>
    %17 = vector.extract_strided_slice %4 {offsets = [6, 0], sizes = [1, 32], strides = [1, 1]} : vector<48x32xf32> to vector<1x32xf32>
    %18 = vector.extract_strided_slice %4 {offsets = [7, 0], sizes = [1, 32], strides = [1, 1]} : vector<48x32xf32> to vector<1x32xf32>
    %19 = vector.extract_strided_slice %4 {offsets = [8, 0], sizes = [1, 32], strides = [1, 1]} : vector<48x32xf32> to vector<1x32xf32>
    %20 = vector.extract_strided_slice %4 {offsets = [9, 0], sizes = [1, 5], strides = [1, 1]} : vector<48x32xf32> to vector<1x5xf32>
    %21 = vector.extract_strided_slice %4 {offsets = [16, 0], sizes = [32, 5], strides = [1, 1]} : vector<48x32xf32> to vector<32x5xf32>
    %22 = arith.truncf %2 : vector<16x8xf32> to vector<16x8xbf16>
    %cst_8 = arith.constant dense<0.000000e+00> : vector<16x32xf32>
    %23 = tpu.matmul %22, %6, %cst_8 {dimension_numbers = #tpu.dot_dimension_numbers<[1], [0], [0], [1], [0, 0, 1, 1], [], []>} : vector<16x8xbf16>, vector<8x32xbf16>, vector<16x32xf32> -> vector<16x32xf32>
    %24 = vector.broadcast %11 : vector<1x32xf32> to vector<16x32xf32>
    %25 = arith.addf %23, %24 : vector<16x32xf32>
    %cst_9 = arith.constant 0.000000e+00 : f32
    %26 = vector.broadcast %cst_9 : f32 to vector<16x32xf32>
    %27 = arith.maximumf %25, %26 : vector<16x32xf32>
    %cst_10 = arith.constant dense<0.000000e+00> : vector<16xf32>
    %28 = vector.multi_reduction <add>, %27, %cst_10 [1] : vector<16x32xf32> to vector<16xf32>
    %29 = vector.shape_cast %28 : vector<16xf32> to vector<16x1xf32>
    %30 = arith.mulf %27, %27 : vector<16x32xf32>
    %cst_11 = arith.constant dense<0.000000e+00> : vector<16xf32>
    %31 = vector.multi_reduction <add>, %30, %cst_11 [1] : vector<16x32xf32> to vector<16xf32>
    %32 = vector.shape_cast %31 : vector<16xf32> to vector<16x1xf32>
    %cst_12 = arith.constant 3.125000e-02 : f32
    %33 = vector.broadcast %cst_12 : f32 to vector<16x1xf32>
    %34 = arith.mulf %29, %33 : vector<16x1xf32>
    %cst_13 = arith.constant 3.125000e-02 : f32
    %35 = vector.broadcast %cst_13 : f32 to vector<16x1xf32>
    %36 = arith.mulf %32, %35 : vector<16x1xf32>
    %37 = arith.mulf %34, %34 : vector<16x1xf32>
    %38 = arith.subf %36, %37 : vector<16x1xf32>
    %39 = vector.broadcast %34 : vector<16x1xf32> to vector<16x32xf32>
    %40 = arith.subf %27, %39 : vector<16x32xf32>
    %cst_14 = arith.constant 9.99999974E-6 : f32
    %41 = vector.broadcast %cst_14 : f32 to vector<16x1xf32>
    %42 = arith.addf %38, %41 : vector<16x1xf32>
    %43 = math.rsqrt %42 : vector<16x1xf32>
    %44 = vector.broadcast %43 : vector<16x1xf32> to vector<16x32xf32>
    %45 = arith.mulf %40, %44 : vector<16x32xf32>
    %46 = vector.broadcast %12 : vector<1x32xf32> to vector<16x32xf32>
    %47 = arith.mulf %45, %46 : vector<16x32xf32>
    %48 = vector.broadcast %13 : vector<1x32xf32> to vector<16x32xf32>
    %49 = arith.addf %47, %48 : vector<16x32xf32>
    %50 = arith.truncf %49 : vector<16x32xf32> to vector<16x32xbf16>
    %cst_15 = arith.constant dense<0.000000e+00> : vector<16x32xf32>
    %51 = tpu.matmul %50, %8, %cst_15 {dimension_numbers = #tpu.dot_dimension_numbers<[1], [0], [0], [1], [0, 0, 1, 1], [], []>} : vector<16x32xbf16>, vector<32x32xbf16>, vector<16x32xf32> -> vector<16x32xf32>
    %52 = vector.broadcast %14 : vector<1x32xf32> to vector<16x32xf32>
    %53 = arith.addf %51, %52 : vector<16x32xf32>
    %cst_16 = arith.constant 0.000000e+00 : f32
    %54 = vector.broadcast %cst_16 : f32 to vector<16x32xf32>
    %55 = arith.maximumf %53, %54 : vector<16x32xf32>
    %cst_17 = arith.constant dense<0.000000e+00> : vector<16xf32>
    %56 = vector.multi_reduction <add>, %55, %cst_17 [1] : vector<16x32xf32> to vector<16xf32>
    %57 = vector.shape_cast %56 : vector<16xf32> to vector<16x1xf32>
    %58 = arith.mulf %55, %55 : vector<16x32xf32>
    %cst_18 = arith.constant dense<0.000000e+00> : vector<16xf32>
    %59 = vector.multi_reduction <add>, %58, %cst_18 [1] : vector<16x32xf32> to vector<16xf32>
    %60 = vector.shape_cast %59 : vector<16xf32> to vector<16x1xf32>
    %cst_19 = arith.constant 3.125000e-02 : f32
    %61 = vector.broadcast %cst_19 : f32 to vector<16x1xf32>
    %62 = arith.mulf %57, %61 : vector<16x1xf32>
    %cst_20 = arith.constant 3.125000e-02 : f32
    %63 = vector.broadcast %cst_20 : f32 to vector<16x1xf32>
    %64 = arith.mulf %60, %63 : vector<16x1xf32>
    %65 = arith.mulf %62, %62 : vector<16x1xf32>
    %66 = arith.subf %64, %65 : vector<16x1xf32>
    %67 = vector.broadcast %62 : vector<16x1xf32> to vector<16x32xf32>
    %68 = arith.subf %55, %67 : vector<16x32xf32>
    %cst_21 = arith.constant 9.99999974E-6 : f32
    %69 = vector.broadcast %cst_21 : f32 to vector<16x1xf32>
    %70 = arith.addf %66, %69 : vector<16x1xf32>
    %71 = math.rsqrt %70 : vector<16x1xf32>
    %72 = vector.broadcast %71 : vector<16x1xf32> to vector<16x32xf32>
    %73 = arith.mulf %68, %72 : vector<16x32xf32>
    %74 = vector.broadcast %15 : vector<1x32xf32> to vector<16x32xf32>
    %75 = arith.mulf %73, %74 : vector<16x32xf32>
    %76 = vector.broadcast %16 : vector<1x32xf32> to vector<16x32xf32>
    %77 = arith.addf %75, %76 : vector<16x32xf32>
    %78 = arith.truncf %77 : vector<16x32xf32> to vector<16x32xbf16>
    %cst_22 = arith.constant dense<0.000000e+00> : vector<16x32xf32>
    %79 = tpu.matmul %78, %10, %cst_22 {dimension_numbers = #tpu.dot_dimension_numbers<[1], [0], [0], [1], [0, 0, 1, 1], [], []>} : vector<16x32xbf16>, vector<32x32xbf16>, vector<16x32xf32> -> vector<16x32xf32>
    %80 = vector.broadcast %17 : vector<1x32xf32> to vector<16x32xf32>
    %81 = arith.addf %79, %80 : vector<16x32xf32>
    %cst_23 = arith.constant 0.000000e+00 : f32
    %82 = vector.broadcast %cst_23 : f32 to vector<16x32xf32>
    %83 = arith.maximumf %81, %82 : vector<16x32xf32>
    %cst_24 = arith.constant dense<0.000000e+00> : vector<16xf32>
    %84 = vector.multi_reduction <add>, %83, %cst_24 [1] : vector<16x32xf32> to vector<16xf32>
    %85 = vector.shape_cast %84 : vector<16xf32> to vector<16x1xf32>
    %86 = arith.mulf %83, %83 : vector<16x32xf32>
    %cst_25 = arith.constant dense<0.000000e+00> : vector<16xf32>
    %87 = vector.multi_reduction <add>, %86, %cst_25 [1] : vector<16x32xf32> to vector<16xf32>
    %88 = vector.shape_cast %87 : vector<16xf32> to vector<16x1xf32>
    %cst_26 = arith.constant 3.125000e-02 : f32
    %89 = vector.broadcast %cst_26 : f32 to vector<16x1xf32>
    %90 = arith.mulf %85, %89 : vector<16x1xf32>
    %cst_27 = arith.constant 3.125000e-02 : f32
    %91 = vector.broadcast %cst_27 : f32 to vector<16x1xf32>
    %92 = arith.mulf %88, %91 : vector<16x1xf32>
    %93 = arith.mulf %90, %90 : vector<16x1xf32>
    %94 = arith.subf %92, %93 : vector<16x1xf32>
    %95 = vector.broadcast %90 : vector<16x1xf32> to vector<16x32xf32>
    %96 = arith.subf %83, %95 : vector<16x32xf32>
    %cst_28 = arith.constant 9.99999974E-6 : f32
    %97 = vector.broadcast %cst_28 : f32 to vector<16x1xf32>
    %98 = arith.addf %94, %97 : vector<16x1xf32>
    %99 = math.rsqrt %98 : vector<16x1xf32>
    %100 = vector.broadcast %99 : vector<16x1xf32> to vector<16x32xf32>
    %101 = arith.mulf %96, %100 : vector<16x32xf32>
    %102 = vector.broadcast %18 : vector<1x32xf32> to vector<16x32xf32>
    %103 = arith.mulf %101, %102 : vector<16x32xf32>
    %104 = vector.broadcast %19 : vector<1x32xf32> to vector<16x32xf32>
    %105 = arith.addf %103, %104 : vector<16x32xf32>
    %cst_29 = arith.constant dense<0.000000e+00> : vector<16x5xf32>
    %106 = tpu.matmul %105, %21, %cst_29 {dimension_numbers = #tpu.dot_dimension_numbers<[1], [0], [0], [1], [0, 0, 1, 1], [], []>} : vector<16x32xf32>, vector<32x5xf32>, vector<16x5xf32> -> vector<16x5xf32>
    %107 = vector.broadcast %20 : vector<1x5xf32> to vector<16x5xf32>
    %108 = arith.addf %106, %107 : vector<16x5xf32>
    %cst_30 = arith.constant dense<0xFF800000> : vector<16xf32>
    %109 = vector.multi_reduction <maximumf>, %108, %cst_30 [1] : vector<16x5xf32> to vector<16xf32>
    %110 = vector.shape_cast %109 : vector<16xf32> to vector<16x1xf32>
    %111 = vector.broadcast %110 : vector<16x1xf32> to vector<16x5xf32>
    %112 = arith.subf %108, %111 : vector<16x5xf32>
    %113 = math.exp %112 : vector<16x5xf32>
    %cst_31 = arith.constant dense<0.000000e+00> : vector<16xf32>
    %114 = vector.multi_reduction <add>, %113, %cst_31 [1] : vector<16x5xf32> to vector<16xf32>
    %115 = vector.shape_cast %114 : vector<16xf32> to vector<16x1xf32>
    %116 = math.log %115 : vector<16x1xf32>
    %cst_32 = arith.constant 0.000000e+00 : f32
    %117 = vector.broadcast %cst_32 : f32 to vector<16x1xf32>
    %118 = arith.subf %117, %116 : vector<16x1xf32>
    %119 = tpu.iota {dimensions = array<i32: 1>} : vector<16x5xi32>
    %120 = vector.broadcast %110 : vector<16x1xf32> to vector<16x5xf32>
    %121 = arith.cmpf oge, %108, %120 : vector<16x5xf32>
    %c5_i32 = arith.constant 5 : i32
    %122 = vector.broadcast %c5_i32 : i32 to vector<16x5xi32>
    %123 = arith.select %121, %119, %122 : vector<16x5xi1>, vector<16x5xi32>
    %cst_33 = arith.constant dense<2147483647> : vector<16xi32>
    %124 = vector.multi_reduction <minsi>, %123, %cst_33 [1] : vector<16x5xi32> to vector<16xi32>
    %125 = vector.shape_cast %124 : vector<16xi32> to vector<16x1xi32>
    %126 = tpu.iota {dimensions = array<i32: 1>} : vector<16x128xi32>
    %c0_i32 = arith.constant 0 : i32
    %127 = vector.broadcast %c0_i32 : i32 to vector<16x128xi32>
    %128 = arith.cmpi eq, %126, %127 : vector<16x128xi32>
    %129 = arith.sitofp %125 : vector<16x1xi32> to vector<16x1xf32>
    %130 = vector.shape_cast %129 : vector<16x1xf32> to vector<16x1xf32>
    %131 = vector.broadcast %130 : vector<16x1xf32> to vector<16x128xf32>
    %c1_i32 = arith.constant 1 : i32
    %132 = vector.broadcast %c1_i32 : i32 to vector<16x128xi32>
    %133 = arith.cmpi eq, %126, %132 : vector<16x128xi32>
    %134 = vector.shape_cast %118 : vector<16x1xf32> to vector<16x1xf32>
    %135 = vector.broadcast %134 : vector<16x1xf32> to vector<16x128xf32>
    %cst_34 = arith.constant 0.000000e+00 : f32
    %136 = vector.broadcast %cst_34 : f32 to vector<16x128xf32>
    %137 = arith.select %133, %135, %136 : vector<16x128xi1>, vector<16x128xf32>
    %138 = arith.select %128, %131, %137 : vector<16x128xi1>, vector<16x128xf32>
    %c0_35 = arith.constant 0 : index
    %c0_36 = arith.constant 0 : index
    %139 = vector.load %arg5[%c0_35, %c0_36] : memref<16x128xf32, #tpu.memory_space<vmem>>, vector<16x128xf32>
    tpu.vector_store %arg5[%c0_35, %c0_36], %138 {strides = array<i32>} : memref<16x128xf32, #tpu.memory_space<vmem>>, vector<16x128xf32>,
    return
  }
  func.func @transform_0(%arg0: i32) -> (i32, i32) {
    %c0_i32 = arith.constant 0 : i32
    %c0_i32_0 = arith.constant 0 : i32
    %c0_i32_1 = arith.constant 0 : i32
    return %c0_i32, %c0_i32_0 : i32, i32
  }
  func.func @transform_1(%arg0: i32) -> (i32, i32) {
    %c0_i32 = arith.constant 0 : i32
    %c0_i32_0 = arith.constant 0 : i32
    %c0_i32_1 = arith.constant 0 : i32
    return %c0_i32, %c0_i32_0 : i32, i32
  }
  func.func @transform_2(%arg0: i32) -> (i32, i32, i32) {
    %c0_i32 = arith.constant 0 : i32
    %c0_i32_0 = arith.constant 0 : i32
    %c0_i32_1 = arith.constant 0 : i32
    %c0_i32_2 = arith.constant 0 : i32
    return %c0_i32, %c0_i32_0, %c0_i32_1 : i32, i32, i32
  }
  func.func @transform_3(%arg0: i32) -> (i32, i32) {
    %c0_i32 = arith.constant 0 : i32
    %c0_i32_0 = arith.constant 0 : i32
    %c0_i32_1 = arith.constant 0 : i32
    return %c0_i32, %c0_i32_0 : i32, i32
  }
  func.func @transform_4(%arg0: i32) -> (i32, i32) {
    %c0_i32 = arith.constant 0 : i32
    %c0_i32_0 = arith.constant 0 : i32
    %c0_i32_1 = arith.constant 0 : i32
    return %c0_i32, %c0_i32_0 : i32, i32
  }
}

</mosaic_0001>

<bundles_post_ra>
// kernel: tpu_custom_call.1
= control target key start
LH: loop header
LB: loop body
LE: loop exit
PB: predicated region body
PF: predicated region fallthrough
CT: control target
= control target key end

     0   :  { %vm23_vm0 = vcmask 130048   ;;  %s865_s0 = inlined_call_operand.vmem [shape: f32[16,16], index: 0, kind: input, shape index: {}]   ;;  %s866_s1 = inlined_call_operand.vmem [shape: f32[16,8], index: 1, kind: input, shape index: {}]   ;;  %s867_s2 = inlined_call_operand.vmem [shape: bf16[3,32,32], index: 2, kind: input, shape index: {}]   ;;  %s868_s3 = inlined_call_operand.vmem [shape: f32[48,32], index: 3, kind: input, shape index: {}]   ;;  %s869_s4 = inlined_call_operand.hbm [shape: f32[16,128], index: 4, kind: output, shape index: {}]  }
   0x1   :  { %v22_v0 = vld [vmem:[%s866_s1 + $0x8] sm:$0xff]  ;;  %v21_v1 = vld [vmem:[%s866_s1] sm:$0xff] }
   0x2   :  { %v19_v2 = vld [vmem:[%s865_s0] sm:$0xff]  ;;  %630 = vmatprep.subr.mxu0 %v22_v0  ;;  %v20_v3 = vld [vmem:[%s865_s0 + $0x8] sm:$0xff] }
   0x3   :  { %634 = vmatprep.mubr.msk.f32.mxu0 %vm23_vm0, %v19_v2  ;;  %631 = vmatpush3.msra.mxu0 %v22_v0 }
   0x4   :  { %632 = vmatprep.subr.mxu0 %v21_v1 }
   0x5   :  { %633 = vmatpush3.msra.mxu0 %v21_v1 }
   0x6   :  { %9 = vsyncpa [#allocation3], 0  ;;  %635 = vmatmul.mubr.msk.f32.vlgmr.msra.gmra.mxu0 %vm23_vm0, %v20_v3  ;;  %v105_v4 = vld [vmem:[%s867_s2] sm:$0xf]  ;;  %vm129_vm1 = vcmask 1043456   ;;  %v721_v5 = vmov 0.0   ;;  %v121_v10 = vlaneseq }
   0x7   :  { %637 = vmatprep.subr.bf16.mxu1 %v721_v5  ;;  %v131_v6 = vsel %vm129_vm1, %v105_v4, 0  ;;  %643 = vmatprep.subr.bf16.mxu0 %v721_v5  ;;  %vm722_vm2 = vmmov 0   ;;  %vm125_vm3 = vcmask 64512   ;;  %v779_v13 = vld [vmem:[%s868_s3] sm:$0xff]  ;;  %vm176_vm4 = vcmask 261120   ;;  %v675_v29 = vld [vmem:[%s867_s2 + $0x18] sm:$0xff]  }
   0x8   :  { %638 = vmatpush3.bf16.msra.mxu1 %v131_v6  ;;  %639 = vmatprep.mubr.msk.bf16.mxu1 %vm722_vm2, %v721_v5  ;;  %v773_v11 = vshrl.u32 %v121_v10, 7  ;;  %v676_v30 = vld [vmem:[%s867_s2 + $0x10] sm:$0xff]   ;;  %vm514_vm5 = vcmask 39936  }
   0x9   :  { %651 = vmatprep.subr.bf16.mxu1 %v721_v5  ;;  %647 = vmatprep.mubr.msk.bf16.mxu0 %vm722_vm2, %v721_v5 }
   0xa   :  { %v123_v12 = vsub.s32 0, %v773_v11  ;;  %644 = vmatpush3.bf16.msra.mxu0 %v675_v29  ;;  %v209_v45 = vsub.s32 1, %v773_v11  ;;  %v215_v50 = vsub.s32 2, %v773_v11  ;;  %v222_v60 = vsub.s32 3, %v773_v11 }
   0xb   :  { %645 = vmatprep.subr.bf16.mxu0 %v721_v5 }
   0xc   :  { %v124_v14 = vrot.slane %v779_v13, %v123_v12  ;;  %v210_v49 = vrot.slane %v779_v13, %v209_v45  ;;  %v216_v55 = vrot.slane %v779_v13, %v215_v50  ;;  %v223_v61 = vrot.slane %v779_v13, %v222_v60 }
   0xe   :  { %646 = vmatpush3.bf16.msra.mxu0 %v676_v30 }
  0xc6   :  { %v636_v7 = vpop.f32.mrf.mxu0 }
  0xc8   :  { %v96_v8 = vpop.f32.mrf.mxu0 }
  0xc9   :  { %v120_v9 = vpack.c.bf16 %v636_v7, %v96_v8 }
  0xcb   :  { %640 = vmatmul.mubr.msk.bf16.vlgmr.msra.gmra.mxu1 %vm125_vm3, %v120_v9 }
  0xcc   :  { %655 = vmatprep.mubr.msk.bf16.mxu1 %vm722_vm2, %v721_v5 }
 0x18b   :  { %v167_v15 = vpop.f32.mrf.mxu1 }
 0x18c   :  { %v168_v16 = vadd.f32 %v167_v15, %v124_v14 }
 0x18d   :  { %v641_v17 = vpop.f32.mrf.mxu1 }
 0x18e   :  { %v174_v18 = vmax.f32 %v168_v16, 0.0  ;;  %v677_v17 = vld [vmem:[%s867_s2 + $0x28] sm:$0xff]  }
 0x18f   :  { %v170_v19 = vpop.f32.mrf.mxu1  ;;  %652 = vmatpush3.bf16.msra.mxu1 %v677_v17 }
 0x190   :  { %v171_v20 = vadd.f32 %v170_v19, %v124_v14  ;;  %v177_v21 = vsel %vm176_vm4, %v174_v18, 0.0  ;;  %v183_v22 = vmul.f32 %v174_v18, %v174_v18  ;;  %653 = vmatprep.subr.bf16.mxu1 %v721_v5 }
 0x191   :  { %178 = vadd.xlane.f32.xlu0 %v177_v21  ;;  %v642_v23 = vpop.f32.mrf.mxu1 }
 0x192   :  { %v175_v24 = vmax.f32 %v171_v20, 0.0  ;;  %v185_v25 = vsel %vm176_vm4, %v183_v22, 0.0 }
 0x193   :  { %186 = vadd.xlane.f32.xlu1 %v185_v25 }
 0x194   :  { %v180_v26 = vsel %vm176_vm4, %v175_v24, 0.0  ;;  %v184_v27 = vmul.f32 %v175_v24, %v175_v24 }
 0x195   :  { %181 = vadd.xlane.f32.xlu0 %v180_v26 }
 0x196   :  { %v188_v28 = vsel %vm176_vm4, %v184_v27, 0.0 }
 0x197   :  { %189 = vadd.xlane.f32.xlu1 %v188_v28 }
 0x21a   :  { %v179_v31 = vpop.xlane.xlu0 %178 }
 0x21b   :  { %v191_v32 = vmul.f32 0.03125, %v179_v31 }
 0x21c   :  { %v187_v33 = vpop.xlane.xlu1 %186 }
 0x21d   :  { %v195_v34 = vmul.f32 %v191_v32, %v191_v32  ;;  %v193_v35 = vmul.f32 0.03125, %v187_v33  ;;  %v199_v46 = vsub.f32 %v174_v18, %v191_v32  ;;  %v678_v18 = vld [vmem:[%s867_s2 + $0x20] sm:$0xff]   ;;  %v314_v33 = vsub.s32 4, %v773_v11 }
 0x21e   :  { %v182_v36 = vpop.xlane.xlu0 %181  ;;  %654 = vmatpush3.bf16.msra.mxu1 %v678_v18 }
 0x21f   :  { %v197_v37 = vsub.f32 %v193_v35, %v195_v34  ;;  %v192_v38 = vmul.f32 0.03125, %v182_v36  ;;  %v315_v36 = vrot.slane %v779_v13, %v314_v33 }
 0x220   :  { %v190_v39 = vpop.xlane.xlu1 %189 }
 0x221   :  { %v201_v40 = vadd.f32 1e-05, %v197_v37  ;;  %v196_v41 = vmul.f32 %v192_v38, %v192_v38  ;;  %v194_v42 = vmul.f32 0.03125, %v190_v39  ;;  %v200_v51 = vsub.f32 %v175_v24, %v192_v38 }
 0x222   :  { %v320_v37 = vsub.s32 5, %v773_v11 }
 0x223   :  { %679 = vrsqrt.f32 %v201_v40  ;;  %v198_v43 = vsub.f32 %v194_v42, %v196_v41 }
 0x224   :  { %v321_v42 = vrot.slane %v779_v13, %v320_v37 }
 0x225   :  { %v202_v44 = vadd.f32 1e-05, %v198_v43 }
 0x227   :  { %681 = vrsqrt.f32 %v202_v44 }
 0x230   :  { %v680_v47 = vpop.eup %679 }
 0x231   :  { %v205_v48 = vmul.f32 %v680_v47, %v199_v46 }
 0x233   :  { %v211_v54 = vmul.f32 %v210_v49, %v205_v48  ;;  %v327_v48 = vsub.s32 6, %v773_v11 }
 0x234   :  { %v682_v52 = vpop.eup %681 }
 0x235   :  { %v206_v53 = vmul.f32 %v682_v52, %v200_v51  ;;  %v217_v57 = vadd.f32 %v216_v55, %v211_v54 }
 0x237   :  { %v212_v56 = vmul.f32 %v210_v49, %v206_v53  ;;  %v328_v49 = vrot.slane %v779_v13, %v327_v48 }
 0x239   :  { %v218_v58 = vadd.f32 %v216_v55, %v212_v56 }
 0x23b   :  { %v219_v59 = vpack.c.bf16 %v218_v58, %v217_v57 }
 0x23d   :  { %648 = vmatmul.mubr.msk.bf16.vlgmr.msra.gmra.mxu0 %vm176_vm4, %v219_v59 }
 0x2fd   :  { %v273_v62 = vpop.f32.mrf.mxu0 }
 0x2fe   :  { %v274_v63 = vadd.f32 %v273_v62, %v223_v61 }
 0x2ff   :  { %v649_v0 = vpop.f32.mrf.mxu0 }
 0x300   :  { %v280_v1 = vmax.f32 %v274_v63, 0.0  ;;  %v119_v0 = vld [vmem:[%s868_s3 + $0x28] sm:$0xff] }
 0x301   :  { %v276_v2 = vpop.f32.mrf.mxu0  ;;  %659 = vmatprep.subr.mxu0 %v119_v0 }
 0x302   :  { %v277_v3 = vadd.f32 %v276_v2, %v223_v61  ;;  %v282_v4 = vsel %vm176_vm4, %v280_v1, 0.0  ;;  %v288_v6 = vmul.f32 %v280_v1, %v280_v1  ;;  %660 = vmatpush3.msra.mxu0 %v119_v0  ;;  %v117_v2 = vld [vmem:[%s868_s3 + $0x18] sm:$0xff] }
 0x303   :  { %283 = vadd.xlane.f32.xlu0 %v282_v4  ;;  %v650_v7 = vpop.f32.mrf.mxu0 }
 0x304   :  { %v281_v8 = vmax.f32 %v277_v3, 0.0  ;;  %v290_v9 = vsel %vm176_vm4, %v288_v6, 0.0  ;;  %v116_v3 = vld [vmem:[%s868_s3 + $0x10] sm:$0xff] }
 0x306   :  { %v285_v14 = vsel %vm176_vm4, %v281_v8, 0.0  ;;  %v289_v15 = vmul.f32 %v281_v8, %v281_v8 }
 0x307   :  { %291 = vadd.xlane.f32.xlu0 %v290_v9  ;;  %286 = vadd.xlane.f32.xlu1 %v285_v14 }
 0x308   :  { %v293_v16 = vsel %vm176_vm4, %v289_v15, 0.0 }
 0x30b   :  { %294 = vadd.xlane.f32.xlu1 %v293_v16 }
 0x38c   :  { %v284_v19 = vpop.xlane.xlu0 %283 }
 0x38d   :  { %v296_v20 = vmul.f32 0.03125, %v284_v19 }
 0x38f   :  { %v300_v23 = vmul.f32 %v296_v20, %v296_v20  ;;  %v304_v5 = vsub.f32 %v280_v1, %v296_v20  ;;  %v118_v1 = vld [vmem:[%s868_s3 + $0x20] sm:$0xff] }
 0x390   :  { %v292_v21 = vpop.xlane.xlu0 %291  ;;  %v287_v22 = vpop.xlane.xlu1 %286  ;;  %661 = vmatprep.subr.mxu0 %v118_v1 }
 0x391   :  { %v298_v24 = vmul.f32 0.03125, %v292_v21  ;;  %v297_v25 = vmul.f32 0.03125, %v287_v22  ;;  %662 = vmatpush3.msra.mxu0 %v118_v1 }
 0x392   :  { %663 = vmatprep.subr.mxu0 %v117_v2 }
 0x393   :  { %v302_v26 = vsub.f32 %v298_v24, %v300_v23  ;;  %v301_v29 = vmul.f32 %v297_v25, %v297_v25  ;;  %v305_v38 = vsub.f32 %v281_v8, %v297_v25  ;;  %664 = vmatpush3.msra.mxu0 %v117_v2  ;;  %v419_v23 = vsub.s32 7, %v773_v11  ;;  %v115_v24 = vld [vmem:[%s868_s3 + $0x8] sm:$0xff]  ;;  %s723_s3 = smov [#allocation2]  }
 0x394   :  { %v295_v27 = vpop.xlane.xlu1 %294  ;;  %665 = vmatprep.subr.mxu0 %v116_v3  ;;  %s590_s16 = sshll.u32 %s723_s3, 4  ;;  %s591_s16 = int_to_ptr.vmem [resolvable:$true] %s590_s16 }
 0x395   :  { %v306_v28 = vadd.f32 1e-05, %v302_v26  ;;  %v299_v30 = vmul.f32 0.03125, %v295_v27  ;;  %666 = vmatpush3.msra.mxu0 %v116_v3  ;;  %v420_v26 = vrot.slane %v779_v13, %v419_v23  ;;  %s699_s17 = scalar_lea.vmem %s591_s16, 256  ;;  %p704_p1 = scmp.lt.s32.totalorder %s591_s16, %s591_s16 }
 0x396   :  { %p700_p0 = scmp.ne.s32.totalorder %s591_s16, %s699_s17  ;;  %p705_p2 = scmp.lt.s32.totalorder %s699_s17, %s699_s17 }
 0x397   :  { %683 = vrsqrt.f32 %v306_v28  ;;  %v303_v31 = vsub.f32 %v299_v30, %v301_v29  ;;  %v426_v28 = vrot.slane %v115_v24, %v123_v12 }
 0x398   :  { %p706_p3 = por %p705_p2, %p704_p1 }
 0x399   :  { %v307_v32 = vadd.f32 1e-05, %v303_v31 }
 0x39a   :  { %p707_p4 = pnand %p706_p3, %p700_p0 }
 0x39b   :  { %685 = vrsqrt.f32 %v307_v32 }
 0x3a4   :  { %v684_v34 = vpop.eup %683 }
 0x3a5   :  { %v310_v35 = vmul.f32 %v684_v34, %v304_v5 }
 0x3a7   :  { %v316_v41 = vmul.f32 %v315_v36, %v310_v35 }
 0x3a8   :  { %v686_v39 = vpop.eup %685 }
 0x3a9   :  { %v311_v40 = vmul.f32 %v686_v39, %v305_v38  ;;  %v322_v44 = vadd.f32 %v321_v42, %v316_v41  ;;  %v852_v41 = vand.u32 127, %v121_v10 }
 0x3ab   :  { %v317_v43 = vmul.f32 %v315_v36, %v311_v40  ;;  %v432_v36 = vrot.slane %v115_v24, %v209_v45  ;;  %vm578_vm10 = vcmp.eq.s32.totalorder %v852_v41, 1  ;;  %vm575_vm11 = vcmp.eq.s32.totalorder %v852_v41, 0 }
 0x3ad   :  { %v323_v46 = vadd.f32 %v321_v42, %v317_v43 }
 0x3af   :  { %v324_v47 = vpack.c.bf16 %v323_v46, %v322_v44 }
 0x3b1   :  { %656 = vmatmul.mubr.msk.bf16.vlgmr.msra.gmra.mxu1 %vm176_vm4, %v324_v47 }
 0x471   :  { %v378_v50 = vpop.f32.mrf.mxu1 }
 0x472   :  { %v379_v51 = vadd.f32 %v378_v50, %v328_v49 }
 0x473   :  { %v657_v52 = vpop.f32.mrf.mxu1 }
 0x474   :  { %v385_v53 = vmax.f32 %v379_v51, 0.0 }
 0x475   :  { %v381_v54 = vpop.f32.mrf.mxu1 }
 0x476   :  { %v382_v55 = vadd.f32 %v381_v54, %v328_v49  ;;  %v387_v56 = vsel %vm176_vm4, %v385_v53, 0.0  ;;  %v393_v57 = vmul.f32 %v385_v53, %v385_v53 }
 0x477   :  { %388 = vadd.xlane.f32.xlu0 %v387_v56  ;;  %v658_v58 = vpop.f32.mrf.mxu1 }
 0x478   :  { %v386_v59 = vmax.f32 %v382_v55, 0.0  ;;  %v395_v60 = vsel %vm176_vm4, %v393_v57, 0.0 }
 0x47a   :  { %v390_v61 = vsel %vm176_vm4, %v386_v59, 0.0  ;;  %v394_v62 = vmul.f32 %v386_v59, %v386_v59 }
 0x47b   :  { %396 = vadd.xlane.f32.xlu0 %v395_v60  ;;  %391 = vadd.xlane.f32.xlu1 %v390_v61 }
 0x47c   :  { %v398_v63 = vsel %vm176_vm4, %v394_v62, 0.0 }
 0x47f   :  { %399 = vadd.xlane.f32.xlu1 %v398_v63 }
 0x500   :  { %v389_v4 = vpop.xlane.xlu0 %388 }
 0x501   :  { %v401_v6 = vmul.f32 0.03125, %v389_v4 }
 0x503   :  { %v405_v9 = vmul.f32 %v401_v6, %v401_v6  ;;  %v409_v25 = vsub.f32 %v385_v53, %v401_v6 }
 0x504   :  { %v397_v7 = vpop.xlane.xlu0 %396  ;;  %v392_v8 = vpop.xlane.xlu1 %391 }
 0x505   :  { %v403_v14 = vmul.f32 0.03125, %v397_v7  ;;  %v402_v15 = vmul.f32 0.03125, %v392_v8 }
 0x507   :  { %v407_v16 = vsub.f32 %v403_v14, %v405_v9  ;;  %v406_v19 = vmul.f32 %v402_v15, %v402_v15  ;;  %v410_v30 = vsub.f32 %v386_v59, %v402_v15 }
 0x508   :  { %v400_v17 = vpop.xlane.xlu1 %399 }
 0x509   :  { %v411_v18 = vadd.f32 1e-05, %v407_v16  ;;  %v404_v20 = vmul.f32 0.03125, %v400_v17 }
 0x50b   :  { %687 = vrsqrt.f32 %v411_v18  ;;  %v408_v21 = vsub.f32 %v404_v20, %v406_v19 }
 0x50d   :  { %v412_v22 = vadd.f32 1e-05, %v408_v21 }
 0x50f   :  { %689 = vrsqrt.f32 %v412_v22 }
 0x518   :  { %v688_v27 = vpop.eup %687 }
 0x519   :  { %v415_v29 = vmul.f32 %v688_v27, %v409_v25 }
 0x51b   :  { %v421_v31 = vmul.f32 %v420_v26, %v415_v29 }
 0x51c   :  { %v690_v32 = vpop.eup %689 }
 0x51d   :  { %v416_v33 = vmul.f32 %v690_v32, %v410_v30  ;;  %v427_v5 = vadd.f32 %v426_v28, %v421_v31 }
 0x51f   :  { %v422_v34 = vmul.f32 %v420_v26, %v416_v33  ;;  %667 = vmatprep.mubr.msk.f32.mxu0 %vm176_vm4, %v427_v5 }
 0x521   :  { %v428_v35 = vadd.f32 %v426_v28, %v422_v34 }
 0x523   :  { %668 = vmatmul.mubr.msk.f32.vlgmr.msra.gmra.mxu0 %vm176_vm4, %v428_v35 }
 0x5e3   :  { %v669_v13 = vpop.f32.mrf.mxu0 }
 0x5e4   :  { %v511_v37 = vadd.f32 %v669_v13, %v432_v36 }
 0x5e5   :  { %v505_v38 = vpop.f32.mrf.mxu0 }
 0x5e6   :  { %v506_v12 = vadd.f32 %v505_v38, %v432_v36  ;;  %v518_v39 = vsel %vm514_vm5, %v511_v37, -inf }
 0x5e7   :  { %519 = vmax.xlane.f32.xlu1 %v518_v39 }
 0x5e8   :  { %v515_v40 = vsel %vm514_vm5, %v506_v12, -inf }
 0x5e9   :  { %516 = vmax.xlane.f32.xlu0 %v515_v40 }
 0x670   :  { %v520_v42 = vpop.xlane.xlu1 %519 }
 0x671   :  { %v522_v43 = vsub.f32 %v511_v37, %v520_v42  ;;  %vm542_vm6 = vcmp.ge.f32.partialorder %v511_v37, %v520_v42 }
 0x672   :  { %v544_v11 = vsel %vm542_vm6, %v852_v41, 5  ;;  %v517_v45 = vpop.xlane.xlu0 %516 }
 0x673   :  { %v525_v44 = vmul.f32 1.442695, %v522_v43  ;;  %v521_v46 = vsub.f32 %v506_v12, %v517_v45  ;;  %vm541_vm7 = vcmp.ge.f32.partialorder %v506_v12, %v517_v45  ;;  %v560_v47 = vsel %vm514_vm5, %v544_v11, 2147483647 }
 0x674   :  { %v543_v48 = vsel %vm541_vm7, %v852_v41, 5  ;;  %v562_v49 = vshra.s32 %v560_v47, 16  ;;  %v561_v58 = vand.u32 65535, %v560_v47 }
 0x675   :  { %691 = vpow2.f32 %v525_v44  ;;  %v523_v50 = vmul.f32 1.442695, %v521_v46  ;;  %v545_v51 = vsel %vm514_vm5, %v543_v48, 2147483647 }
 0x676   :  { %v564_v10 = vcvt.s32.f32 %v562_v49  ;;  %v547_v52 = vshra.s32 %v545_v51, 16  ;;  %v546_v59 = vand.u32 65535, %v545_v51  ;;  %v563_v61 = vcvt.s32.f32 %v561_v58 }
 0x677   :  { %693 = vpow2.f32 %v523_v50 }
 0x678   :  { %565 = vmin.xlane.f32.xlu1 %v564_v10  ;;  %v549_v53 = vcvt.s32.f32 %v547_v52  ;;  %v548_v0 = vcvt.s32.f32 %v546_v59 }
 0x67a   :  { %550 = vmin.xlane.f32.xlu0 %v549_v53 }
 0x682   :  { %v692_v54 = vpop.eup %691 }
 0x683   :  { %v530_v55 = vsel %vm514_vm5, %v692_v54, 0.0 }
 0x684   :  { %v694_v56 = vpop.eup %693  ;;  %531 = vadd.xlane.f32.xlu1 %v530_v55 }
 0x685   :  { %v527_v57 = vsel %vm514_vm5, %v694_v56, 0.0 }
 0x686   :  { %528 = vadd.xlane.f32.xlu0 %v527_v57 }
 0x701   :  { %v566_v60 = vpop.xlane.xlu1 %565 }
 0x702   :  { %vm567_vm8 = vcmp.eq.f32.partialorder %v564_v10, %v566_v60  ;;  %v572_v7 = vcvt.f32.s32 %v566_v60 }
 0x703   :  { %v551_v62 = vpop.xlane.xlu0 %550  ;;  %v568_v63 = vsel %vm567_vm8, %v563_v61, inf }
 0x704   :  { %569 = vmin.xlane.f32.xlu1 %v568_v63  ;;  %vm552_vm9 = vcmp.eq.f32.partialorder %v549_v53, %v551_v62  ;;  %v557_v9 = vcvt.f32.s32 %v551_v62  ;;  %v573_v16 = vshll.u32 %v572_v7, 16 }
 0x705   :  { %v553_v1 = vsel %vm552_vm9, %v548_v0, inf }
 0x706   :  { %554 = vmin.xlane.f32.xlu0 %v553_v1  ;;  %v558_v20 = vshll.u32 %v557_v9, 16 }
 0x70d   :  { %v532_v2 = vpop.xlane.xlu1 %531 }
 0x70e   :  { %695 = vlog2.f32 %v532_v2 }
 0x70f   :  { %v529_v3 = vpop.xlane.xlu0 %528 }
 0x710   :  { %697 = vlog2.f32 %v529_v3 }
 0x71b   :  { %v696_v4 = vpop.eup %695 }
 0x71c   :  { %v536_v8 = vmul.f32 0.6931472, %v696_v4 }
 0x71d   :  { %v698_v6 = vpop.eup %697 }
 0x71e   :  { %v534_v14 = vmul.f32 0.6931472, %v698_v6  ;;  %v538_v18 = vsub.f32 0.0, %v536_v8 }
 0x720   :  { %v537_v23 = vsub.f32 0.0, %v534_v14  ;;  %v580_v26 = vsel %vm578_vm10, %v538_v18, 0.0 }
 0x722   :  { %v579_v29 = vsel %vm578_vm10, %v537_v23, 0.0 }
 0x78d   :  { %v570_v15 = vpop.xlane.xlu1 %569 }
 0x78e   :  { %v571_v17 = vcvt.f32.s32 %v570_v15 }
 0x78f   :  { %v555_v19 = vpop.xlane.xlu0 %554 }
 0x790   :  { %v574_v21 = vadd.s32 %v573_v16, %v571_v17  ;;  %v556_v22 = vcvt.f32.s32 %v555_v19 }
 0x792   :  { %v577_v24 = vcvt.s32.f32 %v574_v21  ;;  %v559_v25 = vadd.s32 %v558_v20, %v556_v22 }
 0x794   :  { %v582_v27 = vsel %vm575_vm11, %v577_v24, %v580_v26  ;;  %v576_v28 = vcvt.s32.f32 %v559_v25 }
 0x795   :  { %584 = vst [vmem:[#allocation2 + $0x8] sm:$0xff] %v582_v27 }
 0x796   :  { %v581_v30 = vsel %vm575_vm11, %v576_v28, %v579_v29 }
 0x797   :  { %583 = vst [vmem:[#allocation2] sm:$0xff] %v581_v30 }
 0x798   :  { %710 = shalt.err (!%p707_p4)
}
 0x799   :  { %s724_s18 = smov 128   ;;  %s725_s19 = smov 8  }
 0x79a   :  { %596 = dma.vmem_to_hbm [thread:$0]  %s591_s16, 256, %s869_s4, [#allocation3], %s724_s18, %s724_s18, %s725_s19  }
 0x79b   :  { %719 = dma.done.wait [#allocation3], 256  }
 0x79c   :  { %720 = vsyncadd [#allocation3], 4294967040 }
 0x79d   :  { %600 = vsyncpa [#allocation3], 1 }

</bundles_post_ra>
